<compile_context>
chip_gen: v6e
topology: v6e:2x2x1
jax: 0.10.0
libtpu: 0.0.40
codegen_flags: <defaults>
</compile_context>

<pallas_src>
import jax
import jax.numpy as jnp
from jax import lax
from jax.experimental import pallas as pl
from jax.experimental.pallas import tpu as pltpu

# ---- Conv config (matches nn.Conv2d(3, 64, kernel_size=3, stride=2)) ----
C_IN = 3
C_OUT = 64
KH = KW = 3
STRIDE = 2
K = KH * KW * C_IN          # 27 real contraction rows
K_PAD = 32                  # padded; row/col 27 carries the bias


def _round_up(x, m):
    return (x + m - 1) // m * m


def _make_conv_kernel(b_blk, oh, w2, hw4):
    """Kernel for one batch block: fused im2col (9 bulk copies per image) + one MXU
    matmul per image, writing a channel-major, lane-dense (C_OUT, OH*W2) slab."""
    mp = oh * w2  # patch columns per image (one pad column per output row)

    def kernel(x_ref, w_ref, o_ref, p_ref):
        # x_ref: (B_BLK, 2, 2, C_IN, H2*W2)  stride-split input, spatial dim on lanes
        # w_ref: (C_OUT, K_PAD)              cols 0..26 weights, col 27 bias, rest 0
        # o_ref: (B_BLK, C_OUT, OH*W2)       channel-major output slab
        # p_ref: (K_PAD, OH*W2) f32          patch-matrix scratch

        # Constant rows of the patch matrix.  Re-done every grid step (cheap: 5 narrow
        # rows) so it is also correct when the parallel grid is sharded across cores,
        # each of which owns its own scratch instance.
        p_ref[K:K + 1, :] = jnp.ones((1, mp), jnp.float32)               # bias row
        p_ref[K + 1:, :] = jnp.zeros((K_PAD - K - 1, mp), jnp.float32)   # zero pad rows

        # The (kh=2, kw=2) tap's bulk copy is one lane short of mp (it would read one
        # element past the image); pre-zero that tail so it is never uninitialized
        # (NaN garbage there would otherwise reach the discarded pad column only, but
        # keep it clean).
        for kh in range(KH):
            for kw in range(KW):
                dh, dw = kh // STRIDE, kw // STRIDE
                start = dh * w2 + dw
                ln = min(mp, hw4 - start)
                if ln < mp:
                    col = (kh * KW + kw) * C_IN
                    p_ref[col:col + C_IN, ln:] = jnp.zeros((C_IN, mp - ln), jnp.float32)

        for b in range(b_blk):
            # Fused im2col: ONE bulk (C_IN, ~mp) copy per tap -- 9 copies per image.
            for kh in range(KH):
                dh, rh = kh // STRIDE, kh % STRIDE
                for kw in range(KW):
                    dw, rw = kw // STRIDE, kw % STRIDE
                    col = (kh * KW + kw) * C_IN
                    start = dh * w2 + dw
                    ln = min(mp, hw4 - start)
                    p_ref[col:col + C_IN, :ln] = x_ref[b, rh, rw, :, start:start + ln]

            # Single MXU matmul per image; the bias column/ones row applies the bias
            # in the same pass.  Output lanes = OH*W2 (lane-dense at realistic sizes).
            o_ref[b] = jnp.dot(w_ref[...], p_ref[...],
                               preferred_element_type=jnp.float32).astype(o_ref.dtype)

    return kernel


def _pick_batch_block(n, oh, w2, hw4):
    """Largest divisor of n whose (padded-tile) VMEM footprint fits a conservative
    budget; prefer leaving >= 2 grid steps so the parallel grid can use both v7x
    TensorCores.  Budget fits every chip's default scoped VMEM limit."""
    lane = 128
    mp = oh * w2
    in_img = 4 * _round_up(C_IN, 8) * _round_up(hw4, lane) * 4      # padded bytes/image
    out_img = C_OUT * _round_up(mp, lane) * 4
    fixed = K_PAD * _round_up(mp, lane) * 4 + 2 * C_OUT * _round_up(K_PAD, lane) * 4
    budget = 12 * 1024 * 1024
    bmax = max(1, int((budget - fixed) // max(2 * (in_img + out_img), 1)))
    bmax = min(bmax, 8, n)                      # cap unrolling too
    divisors = [d for d in range(1, n + 1) if n % d == 0 and d <= bmax]
    preferred = [d for d in divisors if n // d >= 2]
    return max(preferred) if preferred else max(divisors)


@jax.jit
def conv2d_pallas(x_nchw, weight, bias):
    """Conv2d(3->64, k=3, s=2, p=0) matching PyTorch semantics (NCHW in, NCHW out).

    x_nchw:  (N, 3, H, W) float32, H and W even
    weight:  (64, 3, 3, 3) float32 (PyTorch OIHW layout)
    bias:    (64,) float32
    returns: (N, 64, OH, OW) float32
    """
    n, c, h, w = x_nchw.shape
    assert c == C_IN and h % 2 == 0 and w % 2 == 0 and h >= 4 and w >= 4, (c, h, w)
    h2, w2 = h // 2, w // 2
    oh, ow = h2 - 1, w2 - 1          # == (h-3)//2 + 1, (w-3)//2 + 1 for even h, w
    hw4 = h2 * w2
    mp = oh * w2

    # Input prep: NCHW -> (N, 2, 2, C_IN, H2*W2).  One transpose copy; afterwards the
    # kernel only ever needs contiguous lane slices.  Padded VMEM cost per image is
    # 4 * 8(sublanes) * round_up(H2*W2, 128) * 4B  (~1.6 MiB at 224x224).
    x_split = (x_nchw.astype(jnp.float32)
               .reshape(n, C_IN, h2, 2, w2, 2)
               .transpose(0, 3, 5, 1, 2, 4)     # (n, rh, rw, c, h2, w2)
               .reshape(n, 2, 2, C_IN, hw4))

    # Weight prep (tiny; constant-folded under jit): (O,C,KH,KW) -> (O, 27) with column
    # order (kh, kw, ci) matching the kernel's patch rows, padded to 32 with the bias
    # in column 27.
    w_mat = jnp.transpose(weight, (0, 2, 3, 1)).reshape(C_OUT, K).astype(jnp.float32)
    w_pad = (jnp.zeros((C_OUT, K_PAD), jnp.float32)
             .at[:, :K].set(w_mat)
             .at[:, K].set(bias.astype(jnp.float32)))

    b_blk = _pick_batch_block(n, oh, w2, hw4)
    grid = (n // b_blk,)

    out_flat = pl.pallas_call(
        _make_conv_kernel(b_blk, oh, w2, hw4),
        out_shape=jax.ShapeDtypeStruct((n, C_OUT, mp), jnp.float32),
        grid=grid,
        in_specs=[
            pl.BlockSpec((b_blk, 2, 2, C_IN, hw4), lambda i: (i, 0, 0, 0, 0)),
            pl.BlockSpec((C_OUT, K_PAD), lambda i: (0, 0)),
        ],
        out_specs=pl.BlockSpec((b_blk, C_OUT, mp), lambda i: (i, 0, 0)),
        scratch_shapes=[pltpu.VMEM((K_PAD, mp), jnp.float32)],
        compiler_params=pltpu.CompilerParams(
            # Batch blocks are independent -> shard the grid across v7x's two
            # TensorCores; harmless sequential loop on single-TC v5e/v6e.
            dimension_semantics=("parallel",)),
    )(x_split, w_pad)

    # (N, C_OUT, OH*W2) -> NCHW: free reshape + drop the single pad column per output
    # row (contiguous slice; the only remaining wrapper-side copy on the output path).
    return out_flat.reshape(n, C_OUT, oh, w2)[..., :ow]


def init_params(key):
    """Deterministic synthetic params with Conv2d's shapes/init bounds."""
    kw_key, kb_key = jax.random.split(key)
    fan_in = C_IN * KH * KW
    bound = 1.0 / jnp.sqrt(jnp.float32(fan_in))
    weight = jax.random.uniform(kw_key, (C_OUT, C_IN, KH, KW),
                                minval=-bound, maxval=bound, dtype=jnp.float32)
    bias = jax.random.uniform(kb_key, (C_OUT,),
                              minval=-bound, maxval=bound, dtype=jnp.float32)
    return weight, bias


if __name__ == "__main__":
    key = jax.random.PRNGKey(0)
    k_x, k_p = jax.random.split(key)

    # Small input consistent with the module: N=2, C=3, H=W=16 (NCHW like PyTorch).
    x = jax.random.normal(k_x, (2, 3, 16, 16), dtype=jnp.float32)
    weight, bias = init_params(k_p)

    out = jax.block_until_ready(conv2d_pallas(x, weight, bias))

    # Reference check against XLA's conv (same semantics as PyTorch Conv2d, padding=0).
    ref = lax.conv_general_dilated(
        x, weight, window_strides=(STRIDE, STRIDE), padding="VALID",
        dimension_numbers=("NCHW", "OIHW", "NCHW"),
    ) + bias.reshape(1, C_OUT, 1, 1)
    assert out.shape == (2, C_OUT, 7, 7), out.shape
    assert jnp.allclose(out, ref, atol=1e-4, rtol=1e-4), float(jnp.abs(out - ref).max())

    print("KERNEL_OK")
</pallas_src>

<mosaic_0001>
module attributes {stable_mosaic.version = 11 : i64} {
  func.func @kernel(%arg0: i32, %arg1: memref<1x2x2x3x64xf32, #tpu.memory_space<vmem>>, %arg2: memref<64x32xf32, #tpu.memory_space<vmem>>, %arg3: memref<1x64x56xf32, #tpu.memory_space<vmem>>, %arg4: memref<32x56xf32, #tpu.memory_space<vmem>>) attributes {dimension_semantics = [#tpu.dimension_semantics<parallel>], iteration_bounds = array<i64: 2>, scalar_prefetch = 0 : i64, scratch_operands = 1 : i64, tpu.core_type = #tpu.core_type<tc>, window_params = [{transform_indices = @transform_0, window_bounds = array<i64: 1, 2, 2, 3, 64>}, {pipeline_mode = #tpu.pipeline_mode<synchronous>, transform_indices = @transform_1, window_bounds = array<i64: 64, 32>}, {transform_indices = @transform_2, window_bounds = array<i64: 1, 64, 56>}]} {
    %cst = arith.constant 1.000000e+00 : f32
    %0 = vector.broadcast %cst : f32 to vector<1x56xf32>
    %c27 = arith.constant 27 : index
    %c0 = arith.constant 0 : index
    %1 = vector.load %arg4[%c27, %c0] : memref<32x56xf32, #tpu.memory_space<vmem>>, vector<1x56xf32>
    tpu.vector_store %arg4[%c27, %c0], %0 {strides = array<i32>} : memref<32x56xf32, #tpu.memory_space<vmem>>, vector<1x56xf32>,
    %cst_0 = arith.constant 0.000000e+00 : f32
    %2 = vector.broadcast %cst_0 : f32 to vector<4x56xf32>
    %c28 = arith.constant 28 : index
    %c0_1 = arith.constant 0 : index
    %3 = vector.load %arg4[%c28, %c0_1] : memref<32x56xf32, #tpu.memory_space<vmem>>, vector<4x56xf32>
    tpu.vector_store %arg4[%c28, %c0_1], %2 {strides = array<i32>} : memref<32x56xf32, #tpu.memory_space<vmem>>, vector<4x56xf32>,
    %cst_2 = arith.constant 0.000000e+00 : f32
    %4 = vector.broadcast %cst_2 : f32 to vector<3x1xf32>
    %c24 = arith.constant 24 : index
    %c55 = arith.constant 55 : index
    %5 = vector.load %arg4[%c24, %c55] : memref<32x56xf32, #tpu.memory_space<vmem>>, vector<3x1xf32>
    tpu.vector_store %arg4[%c24, %c55], %4 {strides = array<i32>} : memref<32x56xf32, #tpu.memory_space<vmem>>, vector<3x1xf32>,
    %c0_3 = arith.constant 0 : index
    %c0_4 = arith.constant 0 : index
    %c0_5 = arith.constant 0 : index
    %c0_6 = arith.constant 0 : index
    %c0_7 = arith.constant 0 : index
    %6 = vector.load %arg1[%c0_3, %c0_4, %c0_5, %c0_6, %c0_7] : memref<1x2x2x3x64xf32, #tpu.memory_space<vmem>>, vector<1x1x1x3x56xf32>
    %7 = vector.shape_cast %6 : vector<1x1x1x3x56xf32> to vector<3x56xf32>
    %c0_8 = arith.constant 0 : index
    %c0_9 = arith.constant 0 : index
    %8 = vector.load %arg4[%c0_8, %c0_9] : memref<32x56xf32, #tpu.memory_space<vmem>>, vector<3x56xf32>
    tpu.vector_store %arg4[%c0_8, %c0_9], %7 {strides = array<i32>} : memref<32x56xf32, #tpu.memory_space<vmem>>, vector<3x56xf32>,
    %c0_10 = arith.constant 0 : index
    %c0_11 = arith.constant 0 : index
    %c1 = arith.constant 1 : index
    %c0_12 = arith.constant 0 : index
    %c0_13 = arith.constant 0 : index
    %9 = vector.load %arg1[%c0_10, %c0_11, %c1, %c0_12, %c0_13] : memref<1x2x2x3x64xf32, #tpu.memory_space<vmem>>, vector<1x1x1x3x56xf32>
    %10 = vector.shape_cast %9 : vector<1x1x1x3x56xf32> to vector<3x56xf32>
    %c3 = arith.constant 3 : index
    %c0_14 = arith.constant 0 : index
    %11 = vector.load %arg4[%c3, %c0_14] : memref<32x56xf32, #tpu.memory_space<vmem>>, vector<3x56xf32>
    tpu.vector_store %arg4[%c3, %c0_14], %10 {strides = array<i32>} : memref<32x56xf32, #tpu.memory_space<vmem>>, vector<3x56xf32>,
    %c0_15 = arith.constant 0 : index
    %c0_16 = arith.constant 0 : index
    %c0_17 = arith.constant 0 : index
    %c0_18 = arith.constant 0 : index
    %c1_19 = arith.constant 1 : index
    %12 = vector.load %arg1[%c0_15, %c0_16, %c0_17, %c0_18, %c1_19] : memref<1x2x2x3x64xf32, #tpu.memory_space<vmem>>, vector<1x1x1x3x56xf32>
    %13 = vector.shape_cast %12 : vector<1x1x1x3x56xf32> to vector<3x56xf32>
    %c6 = arith.constant 6 : index
    %c0_20 = arith.constant 0 : index
    %14 = vector.load %arg4[%c6, %c0_20] : memref<32x56xf32, #tpu.memory_space<vmem>>, vector<3x56xf32>
    tpu.vector_store %arg4[%c6, %c0_20], %13 {strides = array<i32>} : memref<32x56xf32, #tpu.memory_space<vmem>>, vector<3x56xf32>,
    %c0_21 = arith.constant 0 : index
    %c1_22 = arith.constant 1 : index
    %c0_23 = arith.constant 0 : index
    %c0_24 = arith.constant 0 : index
    %c0_25 = arith.constant 0 : index
    %15 = vector.load %arg1[%c0_21, %c1_22, %c0_23, %c0_24, %c0_25] : memref<1x2x2x3x64xf32, #tpu.memory_space<vmem>>, vector<1x1x1x3x56xf32>
    %16 = vector.shape_cast %15 : vector<1x1x1x3x56xf32> to vector<3x56xf32>
    %c9 = arith.constant 9 : index
    %c0_26 = arith.constant 0 : index
    %17 = vector.load %arg4[%c9, %c0_26] : memref<32x56xf32, #tpu.memory_space<vmem>>, vector<3x56xf32>
    tpu.vector_store %arg4[%c9, %c0_26], %16 {strides = array<i32>} : memref<32x56xf32, #tpu.memory_space<vmem>>, vector<3x56xf32>,
    %c0_27 = arith.constant 0 : index
    %c1_28 = arith.constant 1 : index
    %c1_29 = arith.constant 1 : index
    %c0_30 = arith.constant 0 : index
    %c0_31 = arith.constant 0 : index
    %18 = vector.load %arg1[%c0_27, %c1_28, %c1_29, %c0_30, %c0_31] : memref<1x2x2x3x64xf32, #tpu.memory_space<vmem>>, vector<1x1x1x3x56xf32>
    %19 = vector.shape_cast %18 : vector<1x1x1x3x56xf32> to vector<3x56xf32>
    %c12 = arith.constant 12 : index
    %c0_32 = arith.constant 0 : index
    %20 = vector.load %arg4[%c12, %c0_32] : memref<32x56xf32, #tpu.memory_space<vmem>>, vector<3x56xf32>
    tpu.vector_store %arg4[%c12, %c0_32], %19 {strides = array<i32>} : memref<32x56xf32, #tpu.memory_space<vmem>>, vector<3x56xf32>,
    %c0_33 = arith.constant 0 : index
    %c1_34 = arith.constant 1 : index
    %c0_35 = arith.constant 0 : index
    %c0_36 = arith.constant 0 : index
    %c1_37 = arith.constant 1 : index
    %21 = vector.load %arg1[%c0_33, %c1_34, %c0_35, %c0_36, %c1_37] : memref<1x2x2x3x64xf32, #tpu.memory_space<vmem>>, vector<1x1x1x3x56xf32>
    %22 = vector.shape_cast %21 : vector<1x1x1x3x56xf32> to vector<3x56xf32>
    %c15 = arith.constant 15 : index
    %c0_38 = arith.constant 0 : index
    %23 = vector.load %arg4[%c15, %c0_38] : memref<32x56xf32, #tpu.memory_space<vmem>>, vector<3x56xf32>
    tpu.vector_store %arg4[%c15, %c0_38], %22 {strides = array<i32>} : memref<32x56xf32, #tpu.memory_space<vmem>>, vector<3x56xf32>,
    %c0_39 = arith.constant 0 : index
    %c0_40 = arith.constant 0 : index
    %c0_41 = arith.constant 0 : index
    %c0_42 = arith.constant 0 : index
    %c8 = arith.constant 8 : index
    %24 = vector.load %arg1[%c0_39, %c0_40, %c0_41, %c0_42, %c8] : memref<1x2x2x3x64xf32, #tpu.memory_space<vmem>>, vector<1x1x1x3x56xf32>
    %25 = vector.shape_cast %24 : vector<1x1x1x3x56xf32> to vector<3x56xf32>
    %c18 = arith.constant 18 : index
    %c0_43 = arith.constant 0 : index
    %26 = vector.load %arg4[%c18, %c0_43] : memref<32x56xf32, #tpu.memory_space<vmem>>, vector<3x56xf32>
    tpu.vector_store %arg4[%c18, %c0_43], %25 {strides = array<i32>} : memref<32x56xf32, #tpu.memory_space<vmem>>, vector<3x56xf32>,
    %c0_44 = arith.constant 0 : index
    %c0_45 = arith.constant 0 : index
    %c1_46 = arith.constant 1 : index
    %c0_47 = arith.constant 0 : index
    %c8_48 = arith.constant 8 : index
    %27 = vector.load %arg1[%c0_44, %c0_45, %c1_46, %c0_47, %c8_48] : memref<1x2x2x3x64xf32, #tpu.memory_space<vmem>>, vector<1x1x1x3x56xf32>
    %28 = vector.shape_cast %27 : vector<1x1x1x3x56xf32> to vector<3x56xf32>
    %c21 = arith.constant 21 : index
    %c0_49 = arith.constant 0 : index
    %29 = vector.load %arg4[%c21, %c0_49] : memref<32x56xf32, #tpu.memory_space<vmem>>, vector<3x56xf32>
    tpu.vector_store %arg4[%c21, %c0_49], %28 {strides = array<i32>} : memref<32x56xf32, #tpu.memory_space<vmem>>, vector<3x56xf32>,
    %c0_50 = arith.constant 0 : index
    %c0_51 = arith.constant 0 : index
    %c0_52 = arith.constant 0 : index
    %c0_53 = arith.constant 0 : index
    %c9_54 = arith.constant 9 : index
    %30 = vector.load %arg1[%c0_50, %c0_51, %c0_52, %c0_53, %c9_54] : memref<1x2x2x3x64xf32, #tpu.memory_space<vmem>>, vector<1x1x1x3x55xf32>
    %31 = vector.shape_cast %30 : vector<1x1x1x3x55xf32> to vector<3x55xf32>
    %c24_55 = arith.constant 24 : index
    %c0_56 = arith.constant 0 : index
    %32 = vector.load %arg4[%c24_55, %c0_56] : memref<32x56xf32, #tpu.memory_space<vmem>>, vector<3x55xf32>
    tpu.vector_store %arg4[%c24_55, %c0_56], %31 {strides = array<i32>} : memref<32x56xf32, #tpu.memory_space<vmem>>, vector<3x55xf32>,
    %c0_57 = arith.constant 0 : index
    %c0_58 = arith.constant 0 : index
    %33 = vector.load %arg2[%c0_57, %c0_58] : memref<64x32xf32, #tpu.memory_space<vmem>>, vector<64x32xf32>
    %c0_59 = arith.constant 0 : index
    %c0_60 = arith.constant 0 : index
    %34 = vector.load %arg4[%c0_59, %c0_60] : memref<32x56xf32, #tpu.memory_space<vmem>>, vector<32x56xf32>
    %cst_61 = arith.constant dense<0.000000e+00> : vector<64x56xf32>
    %35 = tpu.matmul %33, %34, %cst_61 {dimension_numbers = #tpu.dot_dimension_numbers<[1], [0], [0], [1], [0, 0, 1, 1], [], []>} : vector<64x32xf32>, vector<32x56xf32>, vector<64x56xf32> -> vector<64x56xf32>
    %c0_62 = arith.constant 0 : index
    %c0_63 = arith.constant 0 : index
    %c0_64 = arith.constant 0 : index
    %36 = vector.load %arg3[%c0_62, %c0_63, %c0_64] : memref<1x64x56xf32, #tpu.memory_space<vmem>>, vector<1x64x56xf32>
    %37 = vector.shape_cast %36 : vector<1x64x56xf32> to vector<64x56xf32>
    %38 = vector.shape_cast %35 : vector<64x56xf32> to vector<1x64x56xf32>
    tpu.vector_store %arg3[%c0_62, %c0_63, %c0_64], %38 {strides = array<i32>} : memref<1x64x56xf32, #tpu.memory_space<vmem>>, vector<1x64x56xf32>,
    return
  }
  func.func @transform_0(%arg0: i32) -> (i32, i32, i32, i32, i32) {
    %c0_i32 = arith.constant 0 : i32
    %c0_i32_0 = arith.constant 0 : i32
    %c0_i32_1 = arith.constant 0 : i32
    %c0_i32_2 = arith.constant 0 : i32
    %c0_i32_3 = arith.constant 0 : i32
    return %arg0, %c0_i32, %c0_i32_0, %c0_i32_1, %c0_i32_2 : i32, i32, i32, i32, i32
  }
  func.func @transform_1(%arg0: i32) -> (i32, i32) {
    %c0_i32 = arith.constant 0 : i32
    %c0_i32_0 = arith.constant 0 : i32
    %c0_i32_1 = arith.constant 0 : i32
    return %c0_i32, %c0_i32_0 : i32, i32
  }
  func.func @transform_2(%arg0: i32) -> (i32, i32, i32) {
    %c0_i32 = arith.constant 0 : i32
    %c0_i32_0 = arith.constant 0 : i32
    %c0_i32_1 = arith.constant 0 : i32
    return %arg0, %c0_i32, %c0_i32_0 : i32, i32, i32
  }
}

</mosaic_0001>

<bundles_post_ra>
// kernel: conv2d_pallas.1
= control target key start
LH: loop header
LB: loop body
LE: loop exit
PB: predicated region body
PF: predicated region fallthrough
CT: control target
= control target key end

     0   :  { %s506_s9 = smov 0   ;;  %s575_s0 = inlined_call_operand.vmem [shape: f32[2,2,2,3,64], index: 0, kind: input, shape index: {}]   ;;  %s576_s1 = inlined_call_operand.vmem [shape: f32[64,32], index: 1, kind: input, shape index: {}]   ;;  %s577_s2 = inlined_call_operand.vmem [shape: f32[2,64,56], index: 2, kind: output, shape index: {}]  }
   0x1 LB: > { %s399_s10 = sadd.s32 4294967295, %s484_s9   ;;  %p403_p0 = scmp.ge.s32.totalorder %s484_s9, 1  ;;  %s484_s9 = sphi %s506_s9, %s12_s9  }
   0x2   : > { %p112_p1 = scmp.lt.s32.totalorder %s484_s9, 3 }
   0x4   : > { %p113_p2 = pnand %p403_p0, %p112_p1 }
   0x5   : > { %p134_p3 = scmp.lt.s32.totalorder (!%p113_p2), %s399_s10, 1  ;;  %s488_s15 = smov (!%p113_p2), 119  }
   0x6   : > { %116 = sbr.rel (%p113_p2) target bundleno = 350 (0x15e), region = 28  ;;  %s489_s16 = smov (!%p113_p2), 120  }
   0x7   : > { %s490_s17 = smov (!%p113_p2), 127  }
   0xb   : > { %vm146_vm0 = vcmask 453632   ;;  %vm148_vm1 = vcmask 453048   ;;  %v486_v0 = vmov 0.0   ;;  %vm144_vm2 = vcmask 450560   ;;  %s579_s10 = smov (!%p134_p3, %s399_s10), 1  ;;  %v193_v11 = vld [vmem:[%s576_s1] sm:$0xff] }
   0xc   : > { %147 = vst.msk [vmem:[#allocation2 + $0x1c] sm:$0xf] %vm146_vm0, %v486_v0  ;;  %v487_v1 = vmov 1.0   ;;  %s423_s11 = sshll.u32 %s579_s10, 4  ;;  %vm151_vm3 = vcmask 452608   ;;  %vm205_vm4 = vcmask 261120  }
   0xd   : > { %149 = vst.msk [vmem:[#allocation2 + $0x18] sm:$0x7] %vm148_vm1, %v486_v0  ;;  %s138_s14 = scalar_lea.vmem %s575_s0, %s423_s11  ;;  %v197_v12 = vld [vmem:[%s576_s1 + $0x20] sm:$0xff]  ;;  %445 = vmatprep.mubr.msk.f32.mxu0 %vm205_vm4, %v193_v11  ;;  %vm191_vm5 = vcmask 444416   ;;  %v194_v22 = vld [vmem:[%s576_s1 + $0x8] sm:$0xff]  ;;  %v195_v24 = vld [vmem:[%s576_s1 + $0x10] sm:$0xff] }
   0xe   : > { %145 = vst.msk [vmem:[#allocation2 + $0x1b] sm:$0x1] %vm144_vm2, %v487_v1  ;;  %v186_v2 = vld [vmem:[%s138_s14] sm:$0x7]  ;;  %v412_v4 = vld [vmem:[%s138_s14 + $0x4] sm:$0x7]  ;;  %451 = vmatprep.mubr.msk.f32.mxu1 %vm205_vm4, %v197_v12 }
   0xf   : > { %v174_v3 = vld [vmem:[%s138_s14] sm:$0x7]  ;;  %188 = vrot.lane.b32.xlu0 %v186_v2, %s488_s15  ;;  %v411_v5 = vld [vmem:[%s138_s14 + $0x8] sm:$0x7]  ;;  %v408_v7 = vld [vmem:[%s138_s14 + $0x4] sm:$0x7] }
  0x10   : > { %176 = vrot.lane.b32.xlu1 %v174_v3, %s489_s16  ;;  %v150_v6 = vld [vmem:[%s138_s14] sm:$0x7]  ;;  %v409_v8 = vld [vmem:[%s138_s14 + $0x8] sm:$0x7]  ;;  %155 = vst.msk [vmem:[#allocation2 + $0x3] sm:$0x7] %vm151_vm3, %v408_v7 }
  0x11   : > { %152 = vst.msk [vmem:[#allocation2] sm:$0x7] %vm151_vm3, %v150_v6  ;;  %164 = vst.msk [vmem:[#allocation2 + $0x9] sm:$0x7] %vm151_vm3, %v409_v8  ;;  %v410_v9 = vld [vmem:[%s138_s14 + $0xc] sm:$0x7] }
  0x12   : > { %167 = vst.msk [vmem:[#allocation2 + $0xc] sm:$0x7] %vm151_vm3, %v410_v9  ;;  %v156_v10 = vld [vmem:[%s138_s14] sm:$0x7]  ;;  %v198_v23 = vld [vmem:[%s576_s1 + $0x28] sm:$0xff]  ;;  %v199_v25 = vld [vmem:[%s576_s1 + $0x30] sm:$0xff] }
  0x13   : > { %170 = vrot.lane.b32.xlu0 %v411_v5, %s490_s17  ;;  %v196_v26 = vld [vmem:[%s576_s1 + $0x18] sm:$0xff]  ;;  %s424_s6 = sshll.u32 %s579_s10, 6  ;;  %vm335_vm6 = vcmask 457728  }
  0x14   : > { %182 = vrot.lane.b32.xlu1 %v412_v4, %s489_s16  ;;  %v200_v27 = vld [vmem:[%s576_s1 + $0x38] sm:$0xff]  ;;  %s143_s11 = scalar_lea.vmem %s577_s2, %s424_s6 }
  0x17   : > { %158 = vrot.lane.b32.xlu0 %v156_v10, %s490_s17 }
  0x81   : > { %v189_v13 = vpop.permute.xlu0 %188 }
  0x82   : > { %v177_v14 = vpop.permute.xlu1 %176  ;;  %192 = vst.msk [vmem:[#allocation2 + $0x18] sm:$0x7] %vm191_vm5, %v189_v13 }
  0x83   : > { %179 = vst.msk [vmem:[#allocation2 + $0x12] sm:$0x7] %vm151_vm3, %v177_v14 }
  0x85   : > { %v171_v16 = vpop.permute.xlu0 %170 }
  0x86   : > { %v183_v15 = vpop.permute.xlu1 %182  ;;  %173 = vst.msk [vmem:[#allocation2 + $0xf] sm:$0x7] %vm151_vm3, %v171_v16 }
  0x87   : > { %185 = vst.msk [vmem:[#allocation2 + $0x15] sm:$0x7] %vm151_vm3, %v183_v15 }
  0x89   : > { %v159_v17 = vpop.permute.xlu0 %158  ;;  %v204_v18 = vld [vmem:[#allocation2 + $0x18] sm:$0xff] }
  0x8a   : > { %161 = vst.msk [vmem:[#allocation2 + $0x6] sm:$0x7] %vm151_vm3, %v159_v17  ;;  %437 = vmatprep.subr.mxu0 %v204_v18  ;;  %457 = vmatprep.subr.mxu1 %v204_v18 }
  0x8b   : > { %438 = vmatpush3.msra.mxu0 %v204_v18  ;;  %461 = vmatpush3.msra.mxu1 %v204_v18 }
  0x8e   : > { %v203_v19 = vld [vmem:[#allocation2 + $0x10] sm:$0xff] }
  0x8f   : > { %439 = vmatprep.subr.mxu0 %v203_v19  ;;  %458 = vmatprep.subr.mxu1 %v203_v19 }
  0x90   : > { %440 = vmatpush3.msra.mxu0 %v203_v19  ;;  %462 = vmatpush3.msra.mxu1 %v203_v19 }
  0x91   : > { %v202_v20 = vld [vmem:[#allocation2 + $0x8] sm:$0xff]  ;;  %v201_v21 = vld [vmem:[#allocation2] sm:$0xff] }
  0x92   : > { %441 = vmatprep.subr.mxu0 %v202_v20  ;;  %459 = vmatprep.subr.mxu1 %v202_v20 }
  0x93   : > { %442 = vmatpush3.msra.mxu0 %v202_v20  ;;  %463 = vmatpush3.msra.mxu1 %v202_v20 }
  0x94   : > { %443 = vmatprep.subr.mxu0 %v201_v21  ;;  %460 = vmatprep.subr.mxu1 %v201_v21 }
  0x95   : > { %444 = vmatpush3.msra.mxu0 %v201_v21  ;;  %464 = vmatpush3.msra.mxu1 %v201_v21 }
  0x96   : > { %446 = vmatmul.mubr.msk.f32.vlgmr.msra.gmra.mxu0 %vm205_vm4, %v194_v22  ;;  %452 = vmatmul.mubr.msk.f32.vlgmr.msra.gmra.mxu1 %vm205_vm4, %v198_v23 }
  0x97   : > { %448 = vmatprep.mubr.msk.f32.mxu0 %vm205_vm4, %v195_v24  ;;  %454 = vmatprep.mubr.msk.f32.mxu1 %vm205_vm4, %v199_v25 }
  0x9a   : > { %449 = vmatmul.mubr.msk.f32.gmra.mxu0 %vm205_vm4, %v196_v26  ;;  %455 = vmatmul.mubr.msk.f32.gmra.mxu1 %vm205_vm4, %v200_v27 }
 0x156   : > { %v447_v28 = vpop.f32.mrf.mxu0  ;;  %v453_v29 = vpop.f32.mrf.mxu1 }
 0x157   : > { %337 = vst.msk [vmem:[%s143_s11 + $0x8] sm:$0xff] %vm335_vm6, %v447_v28  ;;  %341 = vst.msk [vmem:[%s143_s11 + $0x28] sm:$0xff] %vm335_vm6, %v453_v29 }
 0x158   : > { %v296_v30 = vpop.f32.mrf.mxu0  ;;  %v316_v31 = vpop.f32.mrf.mxu1 }
 0x159   : > { %336 = vst.msk [vmem:[%s143_s11] sm:$0xff] %vm335_vm6, %v296_v30  ;;  %340 = vst.msk [vmem:[%s143_s11 + $0x20] sm:$0xff] %vm335_vm6, %v316_v31 }
 0x15a   : > { %v450_v32 = vpop.f32.mrf.mxu0  ;;  %v456_v33 = vpop.f32.mrf.mxu1 }
 0x15b   : > { %339 = vst.msk [vmem:[%s143_s11 + $0x18] sm:$0xff] %vm335_vm6, %v450_v32  ;;  %343 = vst.msk [vmem:[%s143_s11 + $0x38] sm:$0xff] %vm335_vm6, %v456_v33 }
 0x15c   : > { %v306_v34 = vpop.f32.mrf.mxu0  ;;  %v326_v35 = vpop.f32.mrf.mxu1 }
 0x15d   : > { %338 = vst.msk [vmem:[%s143_s11 + $0x10] sm:$0xff] %vm335_vm6, %v306_v34  ;;  %342 = vst.msk [vmem:[%s143_s11 + $0x30] sm:$0xff] %vm335_vm6, %v326_v35 }
 0x15e PF: > { %s12_s9 = sadd.s32 1, %s484_s9  }
 0x15f   : > { %p9_p4 = scmp.ge.s32.totalorder %s12_s9, 4  }
 0x161   :  { %11 = sbr.rel (!%p9_p4) target bundleno = 1 (0x1), region = 61 }

</bundles_post_ra>
